<compile_context>
chip_gen: v7x
topology: tpu7x:2x2x1
jax: 0.10.0
libtpu: 0.0.40
codegen_flags: <defaults>
</compile_context>

<pallas_src>
import functools
import math

import jax
import jax.numpy as jnp
from jax import lax
from jax.experimental import pallas as pl
from jax.experimental.pallas import tpu as pltpu

NONVALID = -1.0                  # the "unknown" label value (module default: -1)
LANE_CANDIDATES = (1024, 512, 256, 128)
ROW_BLOCK_MAX = 2048             # 2048 x 1024 x 4 B = 8 MiB per f32 input tile
VMEM_LIMIT_BYTES = 48 * 1024 * 1024


def _cdiv(a: int, b: int) -> int:
    return -(-a // b)


def _tensorcores_per_chip() -> int:
    # v7x has 2 TensorCores per chip; v5e/v6e have 1.  device_kind is a plain
    # string attribute, so this probe is safe on every backend.
    try:
        kind = jax.devices()[0].device_kind.lower()
    except Exception:
        return 1
    return 2 if "v7" in kind else 1


def _masked_sq_err_kernel(x_ref, t_ref, acc_ref, *, nonvalid, valid_rows,
                          blocks_per_split):
    """Accumulate masked per-element loss of one (block_rows, lane) tile.

    x_ref, t_ref : (block_rows, lane) VMEM tiles of the flattened data in
                   their ORIGINAL dtype (upcast to f32 in-register).
    acc_ref      : (8, lane) f32 partial-sum block, resident across grid axis 1.
    """
    j = pl.program_id(1)

    @pl.when(j == 0)
    def _init():
        acc_ref[...] = jnp.zeros_like(acc_ref)

    r, c = x_ref.shape
    x = x_ref[...].astype(jnp.float32)
    t = t_ref[...].astype(jnp.float32)

    # Global row index of every element in the (rows, lane) slab.  Rows at or
    # past `valid_rows` belong to a ragged last block or a clamped duplicate
    # block: their VMEM contents are unspecified, so force them to contribute
    # exactly 0 (select, so NaN/Inf garbage never propagates).
    row0 = (pl.program_id(0) * blocks_per_split + j) * r
    rid = row0 + lax.broadcasted_iota(jnp.int32, (r, c), 0)
    # masks = torch.where(targets == self.nonvalid, 0, 1).bool()
    # NOTE: nonvalid must be a finite sentinel (NaN would defeat `t != nonvalid`).
    mask = (t != nonvalid) & (rid < valid_rows)

    # TODO(synk): loss_func is abstract in the PyTorch base class (raises
    # NotImplementedError); masked squared error stands in for a concrete
    # child-class per-element loss.  Flatten/mask/reduce semantics match.
    d = jnp.where(mask, x - t, 0.0)
    loss = d * d

    # Partial reduce over groups of 8 rows.  The reshape splits the sublane
    # dim by its native tile (8) so it is layout-preserving (no VMEM retile);
    # the sum is pure VPU vreg adds.  The single expensive cross-lane /
    # cross-sublane reduce happens once in the wrapper.
    acc_ref[...] += loss.reshape(r // 8, 8, c).sum(axis=0)


def cdnet2014_convert(inputs, targets, *, nonvalid=NONVALID, reduction="mean",
                      lane=None, row_block=ROW_BLOCK_MAX, splits=None):
    """JAX/Pallas equivalent of CDNet2014Convert.forward for 'mean'/'sum'."""
    if reduction not in ("mean", "sum"):
        # TODO(synk): 'none' / 'rated' reductions loop over the abstract
        # per-sample loss_func in the reference; not implemented here.
        raise ValueError(
            f"Invalid Value for arg 'reduction': '{reduction}'. "
            "Supported reduction modes in this kernel: 'mean', 'sum'")
    if row_block % 8:
        raise ValueError("row_block must be a multiple of 8")

    total = math.prod(inputs.shape)

    def _jnp_masked_loss_sum(x, t):
        xf = x.astype(jnp.float32)
        tf = t.astype(jnp.float32)
        return jnp.sum(jnp.where(tf != nonvalid, (xf - tf) ** 2, 0.0))

    # Pick a lane-dense 2-D view (rows, lane) that is a FREE metadata reshape
    # of the original contiguous tensor (no jnp.pad / bulk slice copy).
    if lane is None:
        lane = 0
        for cand in LANE_CANDIDATES:
            if total % cand == 0 and total // cand >= 8:
                lane = cand
                break
    elif lane % 128 or total % lane or total // lane < 8:
        raise ValueError(f"lane={lane} incompatible with {total} elements")

    if lane == 0:
        # TODO(synk): tiny (< 1024-element) or non-128-divisible totals have
        # no copy-free lane-dense 2-D view; plain-JAX fallback (negligible).
        s = _jnp_masked_loss_sum(inputs, targets)
        return s if reduction == "sum" else s / total

    rows = total // lane
    rows8 = (rows // 8) * 8            # kernel handles the 8-row-aligned bulk
    x2 = inputs.reshape(rows, lane)    # free: contiguous metadata reshape
    t2 = targets.reshape(rows, lane)

    block_rows = min(rows8, row_block)           # multiple of 8, <= rows
    blocks_total = _cdiv(rows8, block_rows)

    if splits is None:
        splits = _tensorcores_per_chip()
    splits = max(1, min(splits, blocks_total))
    bps = _cdiv(blocks_total, splits)
    leading_sem = (pltpu.CORE_PARALLEL
                   if splits > 1 and _tensorcores_per_chip() > 1
                   else pltpu.ARBITRARY)

    def in_map(s, j):
        # Clamp so every block window starts in-bounds; duplicated blocks are
        # fully masked in the kernel via their (unclamped) global row ids.
        return (jnp.minimum(s * bps + j, blocks_total - 1), 0)

    bytes_accessed = int(rows8 * lane * (x2.dtype.itemsize + t2.dtype.itemsize)
                         + splits * 8 * lane * 4)
    cost = pl.CostEstimate(flops=6 * rows8 * lane, transcendentals=0,
                           bytes_accessed=bytes_accessed)

    partials = pl.pallas_call(
        functools.partial(_masked_sq_err_kernel, nonvalid=nonvalid,
                          valid_rows=rows8, blocks_per_split=bps),
        out_shape=jax.ShapeDtypeStruct((splits * 8, lane), jnp.float32),
        grid_spec=pl.GridSpec(
            grid=(splits, bps),
            in_specs=[pl.BlockSpec((block_rows, lane), in_map),
                      pl.BlockSpec((block_rows, lane), in_map)],
            # One independent (8, lane) partial-sum block per split, resident
            # across the inner reduction axis.
            out_specs=pl.BlockSpec((8, lane), lambda s, j: (s, 0)),
        ),
        compiler_params=pltpu.CompilerParams(
            dimension_semantics=(leading_sem, pltpu.ARBITRARY),
            vmem_limit_bytes=VMEM_LIMIT_BYTES,
        ),
        cost_estimate=cost,
    )(x2, t2)

    # Single final cross-lane / cross-sublane reduction (tiny: splits*8 x lane).
    total_sum = jnp.sum(partials)

    # Sub-8-row tail (< 8*lane elements): plain JAX on a tiny slice instead of
    # padding or copying the whole tensor.
    if rows8 < rows:
        total_sum = total_sum + _jnp_masked_loss_sum(x2[rows8:], t2[rows8:])

    if reduction == "sum":
        return total_sum
    # 'mean' divides by the ORIGINAL element count, matching tensor.mean()
    # over the full masked-loss tensor (NOT the number of valid elements).
    return total_sum / total


if __name__ == "__main__":
    key = jax.random.PRNGKey(0)

    def ref(inputs, targets, reduction):
        x = inputs.astype(jnp.float32).reshape(-1)
        t = targets.astype(jnp.float32).reshape(-1)
        loss = jnp.where(t != NONVALID, (x - t) ** 2, 0.0)
        return jnp.sum(loss) if reduction == "sum" else jnp.mean(loss)

    def check(inputs, targets, **kw):
        for reduction in ("mean", "sum"):
            got = jax.block_until_ready(
                cdnet2014_convert(inputs, targets, nonvalid=NONVALID,
                                  reduction=reduction, **kw))
            want = ref(inputs, targets, reduction)
            assert jnp.allclose(got, want, rtol=1e-5, atol=1e-5), (
                reduction, got, want, kw)

    # 1) Main case: small NCHW segmentation-style batch, f32 / f32.
    k1, k2, k3, k4 = jax.random.split(key, 4)
    B, C, H, W = 2, 4, 16, 16
    inputs = jax.random.uniform(k1, (B, C, H, W), dtype=jnp.float32)
    targets = jax.random.randint(k2, (B, C, H, W), -1, 2).astype(jnp.float32)
    check(inputs, targets)

    # 2) Narrow dtypes (bf16 predictions, int32 labels): no wrapper-side cast,
    #    the upcast to f32 happens in-register inside the kernel.
    check(inputs.astype(jnp.bfloat16), targets.astype(jnp.int32))

    # 3) Ragged tail: 2304 elems -> 9 rows of 256 -> 8-row kernel bulk plus a
    #    1-row plain-JAX tail (no padding of the bulk).
    inputs3 = jax.random.uniform(k3, (2, 3, 24, 16), dtype=jnp.float32)
    targets3 = jax.random.randint(k4, (2, 3, 24, 16), -1, 2).astype(jnp.float32)
    check(inputs3, targets3)

    # 4) Multi-block grid with a ragged last block, a clamped duplicate block,
    #    and a forced 2-way split accumulator (sequential on 1-TC chips).
    k5, k6 = jax.random.split(k3)
    inputs4 = jax.random.uniform(k5, (2, 16, 16, 16), dtype=jnp.float32)
    targets4 = jax.random.randint(k6, (2, 16, 16, 16), -1, 2).astype(jnp.float32)
    check(inputs4, targets4, lane=128, row_block=24, splits=2)

    print("KERNEL_OK")
</pallas_src>

<mosaic_0001>
module attributes {stable_mosaic.version = 11 : i64} {
  func.func @_masked_sq_err_kernel(%arg0: i32, %arg1: i32, %arg2: memref<8x256xf32, #tpu.memory_space<vmem>>, %arg3: memref<8x256xf32, #tpu.memory_space<vmem>>, %arg4: memref<8x256xf32, #tpu.memory_space<vmem>>) attributes {dimension_semantics = [#tpu.dimension_semantics<arbitrary>, #tpu.dimension_semantics<arbitrary>], iteration_bounds = array<i64: 1, 1>, scalar_prefetch = 0 : i64, scratch_operands = 0 : i64, tpu.core_type = #tpu.core_type<tc>, window_params = [{transform_indices = @transform_0, window_bounds = array<i64: 8, 256>}, {transform_indices = @transform_1, window_bounds = array<i64: 8, 256>}, {transform_indices = @transform_2, window_bounds = array<i64: 8, 256>}]} {
    %c0_i32 = arith.constant 0 : i32
    %0 = arith.cmpi eq, %arg1, %c0_i32 : i32
    %1 = arith.extui %0 : i1 to i32
    %c0_i32_0 = arith.constant 0 : i32
    %2 = arith.cmpi ne, %1, %c0_i32_0 : i32
    scf.if %2 {
      %cst_11 = arith.constant 0.000000e+00 : f32
      %25 = vector.broadcast %cst_11 : f32 to vector<8x256xf32>
      %c0_12 = arith.constant 0 : index
      %c0_13 = arith.constant 0 : index
      %26 = vector.load %arg4[%c0_12, %c0_13] : memref<8x256xf32, #tpu.memory_space<vmem>>, vector<8x256xf32>
      tpu.vector_store %arg4[%c0_12, %c0_13], %25 {strides = array<i32>} : memref<8x256xf32, #tpu.memory_space<vmem>>, vector<8x256xf32>,
    } else {
    }
    %c0 = arith.constant 0 : index
    %c0_1 = arith.constant 0 : index
    %3 = vector.load %arg2[%c0, %c0_1] : memref<8x256xf32, #tpu.memory_space<vmem>>, vector<8x256xf32>
    %c0_2 = arith.constant 0 : index
    %c0_3 = arith.constant 0 : index
    %4 = vector.load %arg3[%c0_2, %c0_3] : memref<8x256xf32, #tpu.memory_space<vmem>>, vector<8x256xf32>
    %c1_i32 = arith.constant 1 : i32
    %5 = arith.muli %arg0, %c1_i32 : i32
    %6 = arith.addi %5, %arg1 : i32
    %c8_i32 = arith.constant 8 : i32
    %7 = arith.muli %6, %c8_i32 : i32
    %8 = tpu.iota {dimensions = array<i32: 0>} : vector<8x256xi32>
    %9 = vector.broadcast %7 : i32 to vector<8x256xi32>
    %10 = arith.addi %9, %8 : vector<8x256xi32>
    %cst = arith.constant -1.000000e+00 : f32
    %11 = vector.broadcast %cst : f32 to vector<8x256xf32>
    %12 = arith.cmpf one, %4, %11 : vector<8x256xf32>
    %c8_i32_4 = arith.constant 8 : i32
    %13 = vector.broadcast %c8_i32_4 : i32 to vector<8x256xi32>
    %14 = arith.cmpi slt, %10, %13 : vector<8x256xi32>
    %15 = arith.andi %12, %14 : vector<8x256xi1>
    %16 = arith.subf %3, %4 : vector<8x256xf32>
    %cst_5 = arith.constant 0.000000e+00 : f32
    %17 = vector.broadcast %cst_5 : f32 to vector<8x256xf32>
    %18 = arith.select %15, %16, %17 : vector<8x256xi1>, vector<8x256xf32>
    %19 = arith.mulf %18, %18 : vector<8x256xf32>
    %c0_6 = arith.constant 0 : index
    %c0_7 = arith.constant 0 : index
    %20 = vector.load %arg4[%c0_6, %c0_7] : memref<8x256xf32, #tpu.memory_space<vmem>>, vector<8x256xf32>
    %21 = vector.shape_cast %19 : vector<8x256xf32> to vector<1x8x256xf32>
    %cst_8 = arith.constant dense<0.000000e+00> : vector<8x256xf32>
    %22 = vector.multi_reduction <add>, %21, %cst_8 [0] : vector<1x8x256xf32> to vector<8x256xf32>
    %23 = arith.addf %20, %22 : vector<8x256xf32>
    %c0_9 = arith.constant 0 : index
    %c0_10 = arith.constant 0 : index
    %24 = vector.load %arg4[%c0_9, %c0_10] : memref<8x256xf32, #tpu.memory_space<vmem>>, vector<8x256xf32>
    tpu.vector_store %arg4[%c0_9, %c0_10], %23 {strides = array<i32>} : memref<8x256xf32, #tpu.memory_space<vmem>>, vector<8x256xf32>,
    return
  }
  func.func @transform_0(%arg0: i32, %arg1: i32) -> (i32, i32) {
    %c1_i32 = arith.constant 1 : i32
    %0 = arith.muli %arg0, %c1_i32 : i32
    %1 = arith.addi %0, %arg1 : i32
    %c0_i32 = arith.constant 0 : i32
    %2 = arith.minsi %1, %c0_i32 : i32
    %c0_i32_0 = arith.constant 0 : i32
    %c0_i32_1 = arith.constant 0 : i32
    return %2, %c0_i32_0 : i32, i32
  }
  func.func @transform_1(%arg0: i32, %arg1: i32) -> (i32, i32) {
    %c1_i32 = arith.constant 1 : i32
    %0 = arith.muli %arg0, %c1_i32 : i32
    %1 = arith.addi %0, %arg1 : i32
    %c0_i32 = arith.constant 0 : i32
    %2 = arith.minsi %1, %c0_i32 : i32
    %c0_i32_0 = arith.constant 0 : i32
    %c0_i32_1 = arith.constant 0 : i32
    return %2, %c0_i32_0 : i32, i32
  }
  func.func @transform_2(%arg0: i32, %arg1: i32) -> (i32, i32) {
    %c0_i32 = arith.constant 0 : i32
    %c0_i32_0 = arith.constant 0 : i32
    return %arg0, %c0_i32 : i32, i32
  }
}

</mosaic_0001>

<bundles_post_ra>
// kernel: tpu_custom_call.1
= control target key start
LH: loop header
LB: loop body
LE: loop exit
PB: predicated region body
PF: predicated region fallthrough
CT: control target
= control target key end

     0   :  { %7 = vsyncpa [#allocation3], 0  ;;  %s239_s0 = inlined_call_operand.hbm [shape: f32[8,256], index: 0, kind: input, shape index: {}]   ;;  %s240_s1 = inlined_call_operand.hbm [shape: f32[8,256], index: 1, kind: input, shape index: {}]   ;;  %s241_s2 = inlined_call_operand.hbm [shape: f32[8,256], index: 2, kind: output, shape index: {}]  }
   0x1   :  { %8 = vsyncpa [#allocation6], 0 }
   0x2   :  { %9 = vsyncpa [#allocation4], 0  ;;  %s185_s9 = smov [#allocation2]   ;;  %s186_s11 = smov [#allocation5]  }
   0x3   :  { %s22_s10 = sshll.u32 %s185_s9, 4  ;;  %s38_s12 = sshll.u32 %s186_s11, 4  ;;  %s23_s10 = int_to_ptr.vmem [resolvable:$true] %s22_s10  ;;  %s39_s12 = int_to_ptr.vmem [resolvable:$true] %s38_s12 }
   0x4   :  { %s113_s15 = scalar_lea.hbm %s239_s0, 256 }
   0x5   :  { %p114_p0 = scmp.ne.s32.totalorder %s239_s0, %s113_s15  ;;  %p117_p1 = scmp.lt.u32.totalorder %s113_s15, %s239_s0 }
   0x7   :  { %p119_p2 = pnand %p117_p1, %p114_p0 }
   0x9   :  { %122 = shalt.err (!%p119_p2)
}
   0xa   :  { %s123_s20 = scalar_lea.vmem %s23_s10, 256  ;;  %p128_p4 = scmp.lt.s32.totalorder %s23_s10, %s23_s10 }
   0xb   :  { %p124_p3 = scmp.ne.s32.totalorder %s23_s10, %s123_s20  ;;  %p129_p5 = scmp.lt.s32.totalorder %s123_s20, %s123_s20 }
   0xd   :  { %p130_p6 = por %p129_p5, %p128_p4 }
   0xf   :  { %p131_p7 = pnand %p130_p6, %p124_p3 }
  0x11   :  { %134 = shalt.err (!%p131_p7)
}
  0x12   :  { %25 = dma.hbm_to_vmem [thread:$0]  %s239_s0, 256, %s23_s10, [#allocation3]  }
  0x13   :  { %s135_s25 = scalar_lea.hbm %s240_s1, 256 }
  0x14   :  { %p136_p8 = scmp.ne.s32.totalorder %s240_s1, %s135_s25  ;;  %p139_p9 = scmp.lt.u32.totalorder %s135_s25, %s240_s1 }
  0x16   :  { %p141_p10 = pnand %p139_p9, %p136_p8 }
  0x18   :  { %144 = shalt.err (!%p141_p10)
}
  0x19   :  { %s145_s30 = scalar_lea.vmem %s39_s12, 256  ;;  %p150_p12 = scmp.lt.s32.totalorder %s39_s12, %s39_s12 }
  0x1a   :  { %p146_p11 = scmp.ne.s32.totalorder %s39_s12, %s145_s30  ;;  %p151_p13 = scmp.lt.s32.totalorder %s145_s30, %s145_s30 }
  0x1c   :  { %p152_p0 = por %p151_p13, %p150_p12 }
  0x1e   :  { %p153_p1 = pnand %p152_p0, %p146_p11 }
  0x20   :  { %156 = shalt.err (!%p153_p1)
}
  0x21   :  { %41 = dma.hbm_to_vmem [thread:$0]  %s240_s1, 256, %s39_s12, [#allocation6]  }
  0x22   :  { %179 = dma.done.wait [#allocation3], 256  }
  0x23   :  { %180 = vsyncadd [#allocation3], 4294967040 }
  0x24   :  { %181 = dma.done.wait [#allocation6], 256  }
  0x25   :  { %182 = vsyncadd [#allocation6], 4294967040  ;;  %v60_v0 = vld [vmem:[#allocation2] sm:$0xff]  ;;  %v62_v1 = vld [vmem:[#allocation5] sm:$0xff]  ;;  %s187_s4 = smov [#allocation7]  }
  0x26   :  { %v61_v2 = vld [vmem:[#allocation2 + $0x8] sm:$0xff]  ;;  %vm70_vm0 = vcmp.ne.f32.partialorder %v62_v1, -1.0  ;;  %v75_v3 = vsub.f32 %v60_v0, %v62_v1  ;;  %v63_v4 = vld [vmem:[#allocation5 + $0x8] sm:$0xff]  ;;  %s95_s5 = sshll.u32 %s187_s4, 4  ;;  %s96_s5 = int_to_ptr.vmem [resolvable:$true] %s95_s5 }
  0x27   :  { %vm71_vm1 = vcmp.ne.f32.partialorder %v63_v4, -1.0  ;;  %v76_v5 = vsub.f32 %v61_v2, %v63_v4  ;;  %s157_s1 = scalar_lea.vmem %s96_s5, 256  ;;  %p162_p3 = scmp.lt.s32.totalorder %s96_s5, %s96_s5 }
  0x28   :  { %v77_v6 = vsel %vm70_vm0, %v75_v3, 0.0  ;;  %p158_p2 = scmp.ne.s32.totalorder %s96_s5, %s157_s1  ;;  %p163_p4 = scmp.lt.s32.totalorder %s157_s1, %s157_s1 }
  0x29   :  { %v79_v7 = vmul.f32 %v77_v6, %v77_v6  ;;  %v78_v8 = vsel %vm71_vm1, %v76_v5, 0.0 }
  0x2a   :  { %v80_v9 = vmul.f32 %v78_v8, %v78_v8  ;;  %p164_p5 = por %p163_p4, %p162_p3 }
  0x2b   :  { %87 = vst [vmem:[#allocation7] sm:$0xff] %v79_v7 }
  0x2c   :  { %88 = vst [vmem:[#allocation7 + $0x8] sm:$0xff] %v80_v9  ;;  %p165_p6 = pnand %p164_p5, %p158_p2 }
  0x2e   :  { %168 = shalt.err (!%p165_p6)
}
  0x2f   :  { %s169_s8 = scalar_lea.hbm %s241_s2, 256 }
  0x30   :  { %p170_p7 = scmp.ne.s32.totalorder %s241_s2, %s169_s8  ;;  %p173_p8 = scmp.lt.u32.totalorder %s169_s8, %s241_s2 }
  0x32   :  { %p175_p9 = pnand %p173_p8, %p170_p7 }
  0x34   :  { %178 = shalt.err (!%p175_p9)
}
  0x35   :  { %98 = dma.vmem_to_hbm [thread:$0]  %s96_s5, 256, %s241_s2, [#allocation4]  }
  0x36   :  { %183 = dma.done.wait [#allocation4], 256  }
  0x37   :  { %184 = vsyncadd [#allocation4], 4294967040 }
  0x38   :  { %102 = vsyncpa [#allocation3], 1 }
  0x39   :  { %103 = vsyncpa [#allocation6], 1 }
  0x3a   :  { %104 = vsyncpa [#allocation4], 1 }

</bundles_post_ra>
